<compile_context>
chip_gen: v7x
topology: tpu7x:2x2x1
jax: 0.10.0
libtpu: 0.0.40
codegen_flags: <defaults>
</compile_context>

<pallas_src>
import jax
import jax.numpy as jnp
from jax.experimental import pallas as pl
from jax.experimental.pallas import tpu as pltpu

C_FEAT = 1920        # DenseNet-201 feature channels (fixed by Linear(1920, nb_classes))
POOL_K = 7           # AvgPool2d kernel_size=7, stride=1 on a 7x7 map -> 1x1
LANE = 128
SUBLANE = 8


def _round_up(x, m):
    return (x + m - 1) // m * m


def _pick_batch_tile(batch, tb_max=256):
    """Pick a batch tile (multiple of 8).

    Minimizes padded rows plus per-grid-step overhead (expressed in row
    equivalents), and requires grid >= 2 whenever the batch exceeds one sublane
    group so that v7x's two TensorCores both get work (harmless extra step on
    single-TC v5e/v6e).  Returns (tile_rows, total_padded_rows).
    """
    b8 = _round_up(max(batch, 1), SUBLANE)
    if b8 <= SUBLANE:
        return b8, b8
    STEP_OVERHEAD_ROWS = 48      # ~0.35 us per grid step, in per-row-DMA equivalents
    best = None                  # (score, tb, b_rows)
    for tb in range(SUBLANE, min(tb_max, b8) + 1, SUBLANE):
        b_rows = _round_up(b8, tb)
        grid = b_rows // tb
        if grid < 2:
            continue             # keep both v7x TensorCores busy
        score = b_rows + grid * STEP_OVERHEAD_ROWS
        if best is None or score < best[0] or (score == best[0] and tb > best[1]):
            best = (score, tb, b_rows)
    if best is None:             # defensive fallback (shouldn't trigger for b8 > 8)
        return b8, b8
    return best[1], best[2]


def prepare_classifier_params(w_pt, b_pt):
    """One-time (model-init) preprocessing of nn.Linear(1920, nb_classes) params.

    Transposes to [C, N], pads N up to a multiple of 128 (lane-dense logits
    stores), and casts the weight to bf16 for full-rate MXU + half the DMA.
    Returns (w_prep [C, Np] bf16, b_prep [1, Np] f32, nb_classes).
    """
    N, C = w_pt.shape
    assert C == C_FEAT, "classifier must be Linear(1920, nb_classes)"
    n_pad = _round_up(max(N, 1), LANE)
    w_prep = jnp.pad(jnp.transpose(w_pt, (1, 0)),
                     ((0, 0), (0, n_pad - N))).astype(jnp.bfloat16)
    b_prep = jnp.pad(b_pt, (0, n_pad - N)).reshape(1, n_pad).astype(jnp.float32)
    return w_prep, b_prep, N


def _logits_kernel(f_ref, w_ref, b_ref, y_ref):
    """f_ref : [TB, C]  bf16  pooled features (one batch tile)
       w_ref : [C, Np]  bf16  classifier weight (resident)
       b_ref : [1, Np]  f32   classifier bias (resident)
       y_ref : [TB, Np] f32   logits (bf16 x bf16 MXU matmul, f32 accumulation)."""
    y_ref[...] = (
        jnp.dot(f_ref[...], w_ref[...], preferred_element_type=jnp.float32)
        + b_ref[...]
    )


def densenet_veri_head(x_feat_nchw, w_prep, b_prep, nb_classes):
    """Everything downstream of old_model.features.

    Args:
      x_feat_nchw: [B, 1920, 7, 7]  backbone output (NCHW, as in PyTorch)
      w_prep, b_prep: outputs of prepare_classifier_params (done once at init)
      nb_classes: original (unpadded) class count
    Returns (f, y): ([B, 1920] f32, [B, nb_classes] f32), matching the torch module.
    """
    B, C, H, W = x_feat_nchw.shape
    assert C == C_FEAT and H == POOL_K and W == POOL_K, (
        "Linear(1920, nb_classes) implies a [B, 1920, 7, 7] feature map")
    n_pad = w_prep.shape[1]

    # ---- AvgPool2d(7, stride=1) + flatten -------------------------------------
    # Mean over the contiguous trailing spatial dims of the native NCHW layout:
    # one fused XLA reduction, one HBM read of the feature map, no transpose pass.
    # This f32 result IS the returned embedding `f` (exact, no kernel round trip).
    f_pooled = jnp.mean(x_feat_nchw, axis=(2, 3)).astype(jnp.float32)   # [B, C]

    # bf16 copy for the classifier (fused into the mean epilogue; halves f_in DMA).
    f_bf16 = f_pooled.astype(jnp.bfloat16)

    # ---- Batch tiling ----------------------------------------------------------
    tb, b_rows = _pick_batch_tile(B)
    grid_b = b_rows // tb
    f_in = f_bf16 if b_rows == B else jnp.pad(f_bf16, ((0, b_rows - B), (0, 0)))

    cost = pl.CostEstimate(
        flops=2 * b_rows * C * n_pad,
        transcendentals=0,
        bytes_accessed=(b_rows * C * 2            # f_in (bf16)
                        + C * n_pad * 2           # w (bf16, resident)
                        + n_pad * 4               # b
                        + b_rows * n_pad * 4),    # y
    )

    y_full = pl.pallas_call(
        _logits_kernel,
        out_shape=jax.ShapeDtypeStruct((b_rows, n_pad), jnp.float32),
        grid_spec=pltpu.PrefetchScalarGridSpec(
            num_scalar_prefetch=0,
            grid=(grid_b,),
            in_specs=[
                pl.BlockSpec((tb, C), lambda i: (i, 0)),       # pooled-feature tile
                pl.BlockSpec((C, n_pad), lambda i: (0, 0)),    # weight (resident)
                pl.BlockSpec((1, n_pad), lambda i: (0, 0)),    # bias (resident)
            ],
            out_specs=pl.BlockSpec((tb, n_pad), lambda i: (i, 0)),   # lane-dense y
        ),
        compiler_params=pltpu.CompilerParams(
            dimension_semantics=("parallel",),
            vmem_limit_bytes=32 * 1024 * 1024,
        ),
        cost_estimate=cost,
    )(f_in, w_prep, b_prep)

    return f_pooled, y_full[:B, :nb_classes]


if __name__ == "__main__":
    B = 2
    NB_CLASSES = 16   # small synthetic class count (VeRI itself would be 576)

    key = jax.random.PRNGKey(0)
    kx, kw, kb = jax.random.split(key, 3)

    # Synthetic feature-map input (stands for old_model.features(x)), NCHW.
    x_feat = jax.random.normal(kx, (B, C_FEAT, POOL_K, POOL_K), dtype=jnp.float32)

    # Deterministic nn.Linear(1920, nb_classes)-style init: U(-1/sqrt(fan_in), +1/sqrt(fan_in)).
    bound = 1.0 / jnp.sqrt(jnp.float32(C_FEAT))
    w_pt = jax.random.uniform(kw, (NB_CLASSES, C_FEAT), jnp.float32, -bound, bound)
    b_pt = jax.random.uniform(kb, (NB_CLASSES,), jnp.float32, -bound, bound)

    # One-time parameter preprocessing (transpose / pad / bf16 cast), off the fwd path.
    w_prep, b_prep, n_cls = prepare_classifier_params(w_pt, b_pt)

    f, y = densenet_veri_head(x_feat, w_prep, b_prep, n_cls)
    jax.block_until_ready((f, y))

    # --- Reference checks (same math as the torch module) ----------------------
    f_ref = jnp.mean(x_feat, axis=(2, 3))                 # AvgPool2d(7,1) + flatten
    y_ref_f32 = f_ref @ w_pt.T + b_pt                     # full-f32 reference
    # bf16-operand reference (matches the kernel's MXU precision, f32 accumulate)
    y_ref_bf16 = (f_ref.astype(jnp.bfloat16).astype(jnp.float32)
                  @ w_pt.astype(jnp.bfloat16).astype(jnp.float32).T) + b_pt

    assert f.shape == (B, C_FEAT) and y.shape == (B, NB_CLASSES)
    assert jnp.allclose(f, f_ref, atol=1e-5, rtol=1e-5), "embedding mismatch"
    assert jnp.allclose(y, y_ref_bf16, atol=1e-4, rtol=1e-4), "logits mismatch (bf16 ref)"
    assert jnp.allclose(y, y_ref_f32, atol=5e-3, rtol=5e-3), "logits mismatch (f32 ref)"

    print("KERNEL_OK")
</pallas_src>

<mosaic_0001>
module attributes {stable_mosaic.version = 11 : i64} {
  func.func @_logits_kernel(%arg0: i32, %arg1: memref<8x1920xbf16, #tpu.memory_space<vmem>>, %arg2: memref<1920x128xbf16, #tpu.memory_space<vmem>>, %arg3: memref<1x128xf32, #tpu.memory_space<vmem>>, %arg4: memref<8x128xf32, #tpu.memory_space<vmem>>) attributes {dimension_semantics = [#tpu.dimension_semantics<parallel>], iteration_bounds = array<i64: 1>, scalar_prefetch = 0 : i64, scratch_operands = 0 : i64, tpu.core_type = #tpu.core_type<tc>, window_params = [{transform_indices = @transform_0, window_bounds = array<i64: 8, 1920>}, {pipeline_mode = #tpu.pipeline_mode<synchronous>, transform_indices = @transform_1, window_bounds = array<i64: 1920, 128>}, {pipeline_mode = #tpu.pipeline_mode<synchronous>, transform_indices = @transform_2, window_bounds = array<i64: 1, 128>}, {transform_indices = @transform_3, window_bounds = array<i64: 8, 128>}]} {
    %c0 = arith.constant 0 : index
    %c0_0 = arith.constant 0 : index
    %0 = vector.load %arg1[%c0, %c0_0] : memref<8x1920xbf16, #tpu.memory_space<vmem>>, vector<8x1920xbf16>
    %c0_1 = arith.constant 0 : index
    %c0_2 = arith.constant 0 : index
    %1 = vector.load %arg2[%c0_1, %c0_2] : memref<1920x128xbf16, #tpu.memory_space<vmem>>, vector<1920x128xbf16>
    %cst = arith.constant dense<0.000000e+00> : vector<8x128xf32>
    %2 = tpu.matmul %0, %1, %cst {dimension_numbers = #tpu.dot_dimension_numbers<[1], [0], [0], [1], [0, 0, 1, 1], [], []>} : vector<8x1920xbf16>, vector<1920x128xbf16>, vector<8x128xf32> -> vector<8x128xf32>
    %c0_3 = arith.constant 0 : index
    %c0_4 = arith.constant 0 : index
    %3 = vector.load %arg3[%c0_3, %c0_4] : memref<1x128xf32, #tpu.memory_space<vmem>>, vector<1x128xf32>
    %4 = vector.broadcast %3 : vector<1x128xf32> to vector<8x128xf32>
    %5 = arith.addf %2, %4 : vector<8x128xf32>
    %c0_5 = arith.constant 0 : index
    %c0_6 = arith.constant 0 : index
    %6 = vector.load %arg4[%c0_5, %c0_6] : memref<8x128xf32, #tpu.memory_space<vmem>>, vector<8x128xf32>
    tpu.vector_store %arg4[%c0_5, %c0_6], %5 {strides = array<i32>} : memref<8x128xf32, #tpu.memory_space<vmem>>, vector<8x128xf32>,
    return
  }
  func.func @transform_0(%arg0: i32) -> (i32, i32) {
    %c0_i32 = arith.constant 0 : i32
    %c0_i32_0 = arith.constant 0 : i32
    return %arg0, %c0_i32 : i32, i32
  }
  func.func @transform_1(%arg0: i32) -> (i32, i32) {
    %c0_i32 = arith.constant 0 : i32
    %c0_i32_0 = arith.constant 0 : i32
    %c0_i32_1 = arith.constant 0 : i32
    return %c0_i32, %c0_i32_0 : i32, i32
  }
  func.func @transform_2(%arg0: i32) -> (i32, i32) {
    %c0_i32 = arith.constant 0 : i32
    %c0_i32_0 = arith.constant 0 : i32
    %c0_i32_1 = arith.constant 0 : i32
    return %c0_i32, %c0_i32_0 : i32, i32
  }
  func.func @transform_3(%arg0: i32) -> (i32, i32) {
    %c0_i32 = arith.constant 0 : i32
    %c0_i32_0 = arith.constant 0 : i32
    return %arg0, %c0_i32 : i32, i32
  }
}

</mosaic_0001>

<bundles_post_ra>
// kernel: tpu_custom_call.1
= control target key start
LH: loop header
LB: loop body
LE: loop exit
PB: predicated region body
PF: predicated region fallthrough
CT: control target
= control target key end

     0   :  { %8 = vsyncpa [#allocation3], 0  ;;  %s2013_s0 = inlined_call_operand.hbm [shape: bf16[8,1920], index: 0, kind: input, shape index: {}]   ;;  %s2014_s1 = inlined_call_operand.hbm [shape: bf16[1920,128], index: 1, kind: input, shape index: {}]   ;;  %s2015_s2 = inlined_call_operand.vmem [shape: f32[1,128], index: 2, kind: input, shape index: {}]   ;;  %s2016_s3 = inlined_call_operand.hbm [shape: f32[8,128], index: 3, kind: output, shape index: {}]  }
   0x1   :  { %9 = vsyncpa [#allocation6], 0 }
   0x2   :  { %10 = vsyncpa [#allocation4], 0  ;;  %s1940_s12 = smov [#allocation2]   ;;  %s1941_s14 = smov [#allocation5]  }
   0x3   :  { %s17_s13 = sshll.u32 %s1940_s12, 4  ;;  %s26_s15 = sshll.u32 %s1941_s14, 4  ;;  %s18_s13 = int_to_ptr.vmem [resolvable:$true] %s17_s13  ;;  %s1967_s15 = int_to_ptr.vmem [resolvable:$true] %s26_s15 }
   0x4   :  { %s1868_s18 = scalar_lea.hbm %s2013_s0, 960 }
   0x5   :  { %p1869_p0 = scmp.ne.s32.totalorder %s2013_s0, %s1868_s18  ;;  %p1872_p1 = scmp.lt.u32.totalorder %s1868_s18, %s2013_s0 }
   0x7   :  { %p1874_p2 = pnand %p1872_p1, %p1869_p0 }
   0x9   :  { %1877 = shalt.err (!%p1874_p2)
}
   0xa   :  { %s1878_s23 = scalar_lea.vmem %s18_s13, 960  ;;  %p1883_p4 = scmp.lt.s32.totalorder %s18_s13, %s18_s13 }
   0xb   :  { %p1879_p3 = scmp.ne.s32.totalorder %s18_s13, %s1878_s23  ;;  %p1884_p5 = scmp.lt.s32.totalorder %s1878_s23, %s1878_s23 }
   0xd   :  { %p1885_p6 = por %p1884_p5, %p1883_p4 }
   0xf   :  { %p1886_p7 = pnand %p1885_p6, %p1879_p3 }
  0x11   :  { %1889 = shalt.err (!%p1886_p7)
}
  0x12   :  { %20 = dma.hbm_to_vmem [thread:$0]  %s2013_s0, 960, %s18_s13, [#allocation3]  }
  0x13   :  { %s1890_s28 = scalar_lea.hbm %s2014_s1, 15360 }
  0x14   :  { %p1891_p8 = scmp.ne.s32.totalorder %s2014_s1, %s1890_s28  ;;  %p1894_p9 = scmp.lt.u32.totalorder %s1890_s28, %s2014_s1 }
  0x16   :  { %p1896_p10 = pnand %p1894_p9, %p1891_p8 }
  0x18   :  { %1899 = shalt.err (!%p1896_p10)
}
  0x19   :  { %s1900_s6 = scalar_lea.vmem %s1967_s15, 15360  ;;  %p1905_p12 = scmp.lt.s32.totalorder %s1967_s15, %s1967_s15 }
  0x1a   :  { %p1901_p11 = scmp.ne.s32.totalorder %s1967_s15, %s1900_s6  ;;  %p1906_p13 = scmp.lt.s32.totalorder %s1900_s6, %s1900_s6 }
  0x1c   :  { %p1907_p0 = por %p1906_p13, %p1905_p12 }
  0x1e   :  { %p1908_p1 = pnand %p1907_p0, %p1901_p11 }
  0x20   :  { %1911 = shalt.err (!%p1908_p1)
}
  0x21   :  { %s1942_s0 = smov 64   ;;  %s1943_s7 = smov 4  }
  0x22   :  { %32 = dma.hbm_to_vmem [thread:$0]  %s2014_s1, 15360, %s1967_s15, [#allocation6], %s1942_s0, %s1942_s0, %s1943_s7  }
  0x23   :  { %1934 = dma.done.wait [#allocation3], 960  }
  0x24   :  { %1935 = vsyncadd [#allocation3], 4294966336 }
  0x25   :  { %1936 = dma.done.wait [#allocation6], 15360  }
  0x26   :  { %1937 = vsyncadd [#allocation6], 4294951936  ;;  %v1733_v0 = vld [vmem:[#allocation5 + $0x40] sm:$0xff]   ;;  %v1737_v4 = vld [vmem:[#allocation5 + $0x48] sm:$0xff]   ;;  %vm1945_vm0 = vmmov 0  }
  0x27   :  { %v1734_v1 = vld [vmem:[#allocation5] sm:$0xff]   ;;  %1543 = vmatprep.subr.bf16.mxu0 %v1733_v0  ;;  %v1738_v5 = vld [vmem:[#allocation5 + $0x8] sm:$0xff]   ;;  %v1741_v8 = vld [vmem:[#allocation5 + $0x50] sm:$0xff]  }
  0x28   :  { %v1735_v2 = vld [vmem:[#allocation5 + $0xc0] sm:$0xff]   ;;  %1544 = vmatpush3.bf16.msra.mxu0 %v1734_v1  ;;  %v1739_v6 = vld [vmem:[#allocation5 + $0xc8] sm:$0xff]   ;;  %v1742_v9 = vld [vmem:[#allocation5 + $0x10] sm:$0xff]  }
  0x29   :  { %v1736_v3 = vld [vmem:[#allocation5 + $0x80] sm:$0xff]   ;;  %1565 = vmatprep.subr.bf16.mxu1 %v1735_v2  ;;  %1545 = vmatprep.subr.bf16.mxu0 %v1737_v4  ;;  %v1740_v7 = vld [vmem:[#allocation5 + $0x88] sm:$0xff]   ;;  %v1743_v10 = vld [vmem:[#allocation5 + $0xd0] sm:$0xff]  }
  0x2a   :  { %1566 = vmatpush3.bf16.msra.mxu1 %v1736_v3  ;;  %v1744_v11 = vld [vmem:[#allocation5 + $0x90] sm:$0xff]   ;;  %v1745_v12 = vld [vmem:[#allocation5 + $0x58] sm:$0xff]   ;;  %v1749_v16 = vld [vmem:[#allocation5 + $0x60] sm:$0xff]  }
  0x2b   :  { %1567 = vmatprep.subr.bf16.mxu1 %v1739_v6  ;;  %v1746_v13 = vld [vmem:[#allocation5 + $0x18] sm:$0xff]   ;;  %v1750_v17 = vld [vmem:[#allocation5 + $0x20] sm:$0xff]   ;;  %v1753_v20 = vld [vmem:[#allocation5 + $0x68] sm:$0xff]  }
  0x2c   :  { %1546 = vmatpush3.bf16.msra.mxu0 %v1738_v5  ;;  %v1747_v14 = vld [vmem:[#allocation5 + $0xd8] sm:$0xff]   ;;  %v1751_v18 = vld [vmem:[#allocation5 + $0xe0] sm:$0xff]   ;;  %v1754_v21 = vld [vmem:[#allocation5 + $0x28] sm:$0xff]  }
  0x2d   :  { %1547 = vmatprep.subr.bf16.mxu0 %v1741_v8  ;;  %v1748_v15 = vld [vmem:[#allocation5 + $0x98] sm:$0xff]   ;;  %v1752_v19 = vld [vmem:[#allocation5 + $0xa0] sm:$0xff]   ;;  %v1755_v22 = vld [vmem:[#allocation5 + $0xe8] sm:$0xff]  }
  0x2e   :  { %1568 = vmatpush3.bf16.msra.mxu1 %v1740_v7  ;;  %v1756_v23 = vld [vmem:[#allocation5 + $0xa8] sm:$0xff]   ;;  %v1757_v24 = vld [vmem:[#allocation5 + $0x70] sm:$0xff]   ;;  %v1761_v28 = vld [vmem:[#allocation5 + $0x78] sm:$0xff]  }
  0x2f   :  { %1569 = vmatprep.subr.bf16.mxu1 %v1743_v10  ;;  %v1758_v25 = vld [vmem:[#allocation5 + $0x30] sm:$0xff]   ;;  %v1762_v29 = vld [vmem:[#allocation5 + $0x38] sm:$0xff]   ;;  %v42_v31 = vld [vmem:[#allocation2] sm:$0xff] }
  0x30   :  { %1548 = vmatpush3.bf16.msra.mxu0 %v1742_v9  ;;  %v1759_v26 = vld [vmem:[#allocation5 + $0xf0] sm:$0xff]   ;;  %v1763_v30 = vld [vmem:[#allocation5 + $0xf8] sm:$0xff]   ;;  %v1408_v32 = vcombine.low %v42_v31, %v42_v31  ;;  %v1409_v33 = vcombine.high %v42_v31, %v42_v31  ;;  %v1767_v35 = vld [vmem:[#allocation5 + $0x140] sm:$0xff]  }
  0x31   :  { %1549 = vmatprep.subr.bf16.mxu0 %v1745_v12  ;;  %v1760_v27 = vld [vmem:[#allocation5 + $0xb0] sm:$0xff]   ;;  %v1766_v34 = vld [vmem:[#allocation5 + $0xb8] sm:$0xff]   ;;  %v1770_v39 = vld [vmem:[#allocation5 + $0x100] sm:$0xff]  }
  0x32   :  { %1570 = vmatpush3.bf16.msra.mxu1 %v1744_v11  ;;  %v43_v36 = vld [vmem:[#allocation2 + $0x8] sm:$0xff]  ;;  %1102 = vmatprep.mubr.bf16.mxu0 %v1409_v33  ;;  %v1771_v40 = vld [vmem:[#allocation5 + $0x1c0] sm:$0xff]   ;;  %v1781_v50 = vld [vmem:[#allocation5 + $0x158] sm:$0xff]  }
  0x33   :  { %1571 = vmatprep.subr.bf16.mxu1 %v1747_v14  ;;  %v1410_v37 = vcombine.low %v43_v36, %v43_v36  ;;  %v1411_v38 = vcombine.high %v43_v36, %v43_v36  ;;  %v1772_v41 = vld [vmem:[#allocation5 + $0x180] sm:$0xff]   ;;  %v1773_v42 = vld [vmem:[#allocation5 + $0x148] sm:$0xff]   ;;  %v1777_v46 = vld [vmem:[#allocation5 + $0x150] sm:$0xff]  }
  0x34   :  { %1550 = vmatpush3.bf16.msra.mxu0 %v1746_v13  ;;  %v1774_v43 = vld [vmem:[#allocation5 + $0x108] sm:$0xff]   ;;  %v1778_v47 = vld [vmem:[#allocation5 + $0x110] sm:$0xff]   ;;  %v1782_v51 = vld [vmem:[#allocation5 + $0x118] sm:$0xff]  }
  0x35   :  { %1551 = vmatprep.subr.bf16.mxu0 %v1749_v16  ;;  %1142 = vmatprep.mubr.bf16.mxu1 %v1411_v38  ;;  %v1775_v44 = vld [vmem:[#allocation5 + $0x1c8] sm:$0xff]   ;;  %v1779_v48 = vld [vmem:[#allocation5 + $0x1d0] sm:$0xff]   ;;  %v1783_v52 = vld [vmem:[#allocation5 + $0x1d8] sm:$0xff]  }
  0x36   :  { %1572 = vmatpush3.bf16.msra.mxu1 %v1748_v15  ;;  %v1776_v45 = vld [vmem:[#allocation5 + $0x188] sm:$0xff]   ;;  %v1780_v49 = vld [vmem:[#allocation5 + $0x190] sm:$0xff]   ;;  %v1784_v53 = vld [vmem:[#allocation5 + $0x198] sm:$0xff]  }
  0x37   :  { %1573 = vmatprep.subr.bf16.mxu1 %v1751_v18  ;;  %v1785_v54 = vld [vmem:[#allocation5 + $0x160] sm:$0xff]   ;;  %v1789_v58 = vld [vmem:[#allocation5 + $0x168] sm:$0xff]   ;;  %v1793_v62 = vld [vmem:[#allocation5 + $0x170] sm:$0xff]  }
  0x38   :  { %1552 = vmatpush3.bf16.msra.mxu0 %v1750_v17  ;;  %v1786_v55 = vld [vmem:[#allocation5 + $0x120] sm:$0xff]   ;;  %v1790_v59 = vld [vmem:[#allocation5 + $0x128] sm:$0xff]   ;;  %v1794_v63 = vld [vmem:[#allocation5 + $0x130] sm:$0xff]  }
  0x39   :  { %1553 = vmatprep.subr.bf16.mxu0 %v1753_v20  ;;  %v1787_v56 = vld [vmem:[#allocation5 + $0x1e0] sm:$0xff]   ;;  %v1791_v60 = vld [vmem:[#allocation5 + $0x1e8] sm:$0xff]   ;;  %v1795_v0 = vld [vmem:[#allocation5 + $0x1f0] sm:$0xff]  }
  0x3a   :  { %1574 = vmatpush3.bf16.msra.mxu1 %v1752_v19  ;;  %v1788_v57 = vld [vmem:[#allocation5 + $0x1a0] sm:$0xff]   ;;  %v1792_v61 = vld [vmem:[#allocation5 + $0x1a8] sm:$0xff]   ;;  %v1796_v1 = vld [vmem:[#allocation5 + $0x1b0] sm:$0xff]  }
  0x3b   :  { %1575 = vmatprep.subr.bf16.mxu1 %v1755_v22  ;;  %v1797_v2 = vld [vmem:[#allocation5 + $0x178] sm:$0xff]   ;;  %v1803_v9 = vld [vmem:[#allocation5 + $0x240] sm:$0xff]   ;;  %v1809_v16 = vld [vmem:[#allocation5 + $0x248] sm:$0xff]  }
  0x3c   :  { %1554 = vmatpush3.bf16.msra.mxu0 %v1754_v21  ;;  %v1798_v3 = vld [vmem:[#allocation5 + $0x138] sm:$0xff]   ;;  %v1806_v13 = vld [vmem:[#allocation5 + $0x200] sm:$0xff]   ;;  %v1810_v17 = vld [vmem:[#allocation5 + $0x208] sm:$0xff]  }
  0x3d   :  { %1555 = vmatprep.subr.bf16.mxu0 %v1757_v24  ;;  %v1799_v4 = vld [vmem:[#allocation5 + $0x1f8] sm:$0xff]   ;;  %v1807_v14 = vld [vmem:[#allocation5 + $0x2c0] sm:$0xff]   ;;  %v1811_v18 = vld [vmem:[#allocation5 + $0x2c8] sm:$0xff]  }
  0x3e   :  { %1576 = vmatpush3.bf16.msra.mxu1 %v1756_v23  ;;  %v44_v5 = vld [vmem:[#allocation2 + $0x10] sm:$0xff]  ;;  %v45_v10 = vld [vmem:[#allocation2 + $0x18] sm:$0xff]  ;;  %v1812_v19 = vld [vmem:[#allocation5 + $0x288] sm:$0xff]  }
  0x3f   :  { %1577 = vmatprep.subr.bf16.mxu1 %v1759_v26  ;;  %v1412_v6 = vcombine.low %v44_v5, %v44_v5  ;;  %v1413_v7 = vcombine.high %v44_v5, %v44_v5  ;;  %v1802_v8 = vld [vmem:[#allocation5 + $0x1b8] sm:$0xff]   ;;  %v1414_v11 = vcombine.low %v45_v10, %v45_v10  ;;  %v1415_v12 = vcombine.high %v45_v10, %v45_v10  ;;  %v1808_v15 = vld [vmem:[#allocation5 + $0x280] sm:$0xff]   ;;  %v1813_v20 = vld [vmem:[#allocation5 + $0x250] sm:$0xff]  }
  0x40   :  { %1556 = vmatpush3.bf16.msra.mxu0 %v1758_v25  ;;  %v1814_v21 = vld [vmem:[#allocation5 + $0x210] sm:$0xff]   ;;  %v1817_v24 = vld [vmem:[#allocation5 + $0x258] sm:$0xff]   ;;  %v1824_v31 = vld [vmem:[#allocation5 + $0x2a0] sm:$0xff]  }
  0x41   :  { %1557 = vmatprep.subr.bf16.mxu0 %v1761_v28  ;;  %v1815_v22 = vld [vmem:[#allocation5 + $0x2d0] sm:$0xff]   ;;  %v1818_v25 = vld [vmem:[#allocation5 + $0x218] sm:$0xff]   ;;  %v1821_v28 = vld [vmem:[#allocation5 + $0x260] sm:$0xff]  }
  0x42   :  { %1578 = vmatpush3.bf16.msra.mxu1 %v1760_v27  ;;  %v1816_v23 = vld [vmem:[#allocation5 + $0x290] sm:$0xff]   ;;  %v1819_v26 = vld [vmem:[#allocation5 + $0x2d8] sm:$0xff]   ;;  %v1826_v33 = vld [vmem:[#allocation5 + $0x228] sm:$0xff]  }
  0x43   :  { %1579 = vmatprep.subr.bf16.mxu1 %v1763_v30  ;;  %v1820_v27 = vld [vmem:[#allocation5 + $0x298] sm:$0xff]   ;;  %v1823_v30 = vld [vmem:[#allocation5 + $0x2e0] sm:$0xff]   ;;  %v1829_v36 = vld [vmem:[#allocation5 + $0x270] sm:$0xff]  }
  0x44   :  { %1558 = vmatpush3.bf16.msra.mxu0 %v1762_v29  ;;  %v1822_v29 = vld [vmem:[#allocation5 + $0x220] sm:$0xff]   ;;  %v1831_v38 = vld [vmem:[#allocation5 + $0x2f0] sm:$0xff]   ;;  %v1858_v5 = vld [vmem:[#allocation5 + $0x3a8] sm:$0xff]  }
  0x45   :  { %1587 = vmatprep.subr.bf16.mxu0 %v1767_v35  ;;  %v1828_v35 = vld [vmem:[#allocation5 + $0x2a8] sm:$0xff]   ;;  %v1861_v10 = vld [vmem:[#allocation5 + $0x3b0] sm:$0xff]  }
  0x46   :  { %1580 = vmatpush3.bf16.msra.mxu1 %v1766_v34  ;;  %v1827_v34 = vld [vmem:[#allocation5 + $0x2e8] sm:$0xff]  }
  0x47   :  { %1103 = vmatmul.mubr.bf16.vlgmr.msra.gmra.mrb[0].mxu0 %v1408_v32  ;;  %1609 = vmatprep.subr.bf16.mxu1 %v1771_v40  ;;  %v1825_v32 = vld [vmem:[#allocation5 + $0x268] sm:$0xff]   ;;  %v1833_v40 = vld [vmem:[#allocation5 + $0x278] sm:$0xff]  }
  0x48   :  { %1588 = vmatpush3.bf16.msra.mxu0 %v1770_v39  ;;  %1182 = vmatprep.mubr.bf16.mxu0 %v1413_v7  ;;  %v1832_v39 = vld [vmem:[#allocation5 + $0x2b0] sm:$0xff]  }
  0x49   :  { %1143 = vmatmul.mubr.bf16.vlgmr.msra.gmra.mrb[0].mxu1 %v1410_v37  ;;  %1589 = vmatprep.subr.bf16.mxu0 %v1773_v42  ;;  %v1830_v37 = vld [vmem:[#allocation5 + $0x230] sm:$0xff]   ;;  %v1835_v42 = vld [vmem:[#allocation5 + $0x2f8] sm:$0xff]  }
  0x4a   :  { %1610 = vmatpush3.bf16.msra.mxu1 %v1772_v41  ;;  %1222 = vmatprep.mubr.bf16.mxu1 %v1415_v12  ;;  %v1834_v41 = vld [vmem:[#allocation5 + $0x238] sm:$0xff]  }
  0x4b   :  { %1611 = vmatprep.subr.bf16.mxu1 %v1775_v44  ;;  %v48_v7 = vld [vmem:[#allocation2 + $0x30] sm:$0xff] }
  0x4c   :  { %1590 = vmatpush3.bf16.msra.mxu0 %v1774_v43  ;;  %v46_v43 = vld [vmem:[#allocation2 + $0x20] sm:$0xff]  ;;  %v1866_v12 = vld [vmem:[#allocation5 + $0x3b8] sm:$0xff]  }
  0x4d   :  { %1591 = vmatprep.subr.bf16.mxu0 %v1777_v46  ;;  %v1416_v44 = vcombine.low %v46_v43, %v46_v43  ;;  %v1838_v46 = vld [vmem:[#allocation5 + $0x2b8] sm:$0xff]  }
  0x4e   :  { %1612 = vmatpush3.bf16.msra.mxu1 %v1776_v45  ;;  %v1417_v45 = vcombine.high %v46_v43, %v46_v43 }
  0x4f   :  { %1613 = vmatprep.subr.bf16.mxu1 %v1779_v48  ;;  %v47_v48 = vld [vmem:[#allocation2 + $0x28] sm:$0xff] }
  0x50   :  { %1592 = vmatpush3.bf16.msra.mxu0 %v1778_v47  ;;  %v1839_v47 = vld [vmem:[#allocation5 + $0x340] sm:$0xff]  }
  0x51   :  { %1593 = vmatprep.subr.bf16.mxu0 %v1781_v50  ;;  %v1419_v50 = vcombine.high %v47_v48, %v47_v48 }
  0x52   :  { %1614 = vmatpush3.bf16.msra.mxu1 %v1780_v49  ;;  %v1418_v49 = vcombine.low %v47_v48, %v47_v48 }
  0x53   :  { %1615 = vmatprep.subr.bf16.mxu1 %v1783_v52  ;;  %v1843_v52 = vld [vmem:[#allocation5 + $0x380] sm:$0xff]  }
  0x54   :  { %1594 = vmatpush3.bf16.msra.mxu0 %v1782_v51  ;;  %v1842_v51 = vld [vmem:[#allocation5 + $0x300] sm:$0xff]  }
  0x55   :  { %1595 = vmatprep.subr.bf16.mxu0 %v1785_v54  ;;  %v1944_v54 = vmov 0.0  }
  0x56   :  { %1616 = vmatpush3.bf16.msra.mxu1 %v1784_v53  ;;  %v1844_v53 = vld [vmem:[#allocation5 + $0x348] sm:$0xff]  }
  0x57   :  { %1617 = vmatprep.subr.bf16.mxu1 %v1787_v56  ;;  %v1846_v56 = vld [vmem:[#allocation5 + $0x388] sm:$0xff]  }
  0x58   :  { %1596 = vmatpush3.bf16.msra.mxu0 %v1786_v55  ;;  %v1845_v55 = vld [vmem:[#allocation5 + $0x308] sm:$0xff]  }
  0x59   :  { %1597 = vmatprep.subr.bf16.mxu0 %v1789_v58  ;;  %v1848_v58 = vld [vmem:[#allocation5 + $0x310] sm:$0xff]  }
  0x5a   :  { %1618 = vmatpush3.bf16.msra.mxu1 %v1788_v57  ;;  %v1847_v57 = vld [vmem:[#allocation5 + $0x350] sm:$0xff]  }
  0x5b   :  { %1619 = vmatprep.subr.bf16.mxu1 %v1791_v60  ;;  %v1850_v60 = vld [vmem:[#allocation5 + $0x358] sm:$0xff]  }
  0x5c   :  { %1598 = vmatpush3.bf16.msra.mxu0 %v1790_v59  ;;  %v1849_v59 = vld [vmem:[#allocation5 + $0x390] sm:$0xff]  }
  0x5d   :  { %1599 = vmatprep.subr.bf16.mxu0 %v1793_v62  ;;  %v1853_v62 = vld [vmem:[#allocation5 + $0x360] sm:$0xff]  }
  0x5e   :  { %1620 = vmatpush3.bf16.msra.mxu1 %v1792_v61  ;;  %v1851_v61 = vld [vmem:[#allocation5 + $0x318] sm:$0xff]  }
  0x5f   :  { %1621 = vmatprep.subr.bf16.mxu1 %v1795_v0  ;;  %v1854_v0 = vld [vmem:[#allocation5 + $0x320] sm:$0xff]  }
  0x60   :  { %1600 = vmatpush3.bf16.msra.mxu0 %v1794_v63  ;;  %v1852_v63 = vld [vmem:[#allocation5 + $0x398] sm:$0xff]  }
  0x61   :  { %1601 = vmatprep.subr.bf16.mxu0 %v1797_v2  ;;  %v1855_v2 = vld [vmem:[#allocation5 + $0x3a0] sm:$0xff]  }
  0x62   :  { %1622 = vmatpush3.bf16.msra.mxu1 %v1796_v1  ;;  %v1856_v1 = vld [vmem:[#allocation5 + $0x368] sm:$0xff]  }
  0x63   :  { %1623 = vmatprep.subr.bf16.mxu1 %v1799_v4  ;;  %v1859_v4 = vld [vmem:[#allocation5 + $0x370] sm:$0xff]  }
  0x64   :  { %1602 = vmatpush3.bf16.msra.mxu0 %v1798_v3  ;;  %v1857_v3 = vld [vmem:[#allocation5 + $0x328] sm:$0xff]  }
  0x65   :  { %1631 = vmatprep.subr.bf16.mxu0 %v1803_v9  ;;  %v1421_v9 = vcombine.high %v48_v7, %v48_v7 }
  0x66   :  { %1624 = vmatpush3.bf16.msra.mxu1 %v1802_v8  ;;  %v1862_v8 = vld [vmem:[#allocation5 + $0x378] sm:$0xff]  }
  0x67   :  { %1183 = vmatmul.mubr.bf16.vlgmr.msra.gmra.mrb[4].mxu0 %v1412_v6  ;;  %1653 = vmatprep.subr.bf16.mxu1 %v1807_v14  ;;  %v1860_v6 = vld [vmem:[#allocation5 + $0x330] sm:$0xff]   ;;  %v1867_v14 = vld [vmem:[#allocation2 + $0x38] ss:$0 sps:$4 sm:$0xff]  }
  0x68   :  { %1632 = vmatpush3.bf16.msra.mxu0 %v1806_v13  ;;  %1262 = vmatprep.mubr.bf16.mxu0 %v1417_v45  ;;  %v1420_v13 = vcombine.low %v48_v7, %v48_v7 }
  0x69   :  { %1223 = vmatmul.mubr.bf16.vlgmr.msra.gmra.mrb[4].mxu1 %v1414_v11  ;;  %1633 = vmatprep.subr.bf16.mxu0 %v1809_v16  ;;  %v1863_v11 = vld [vmem:[#allocation5 + $0x338] sm:$0xff]   ;;  %v1407_v16 = vld [vmem:[%s2015_s2] ss:$0 sm:$0xff]  ;;  %s1946_s2 = smov [#allocation7]  }
  0x6a   :  { %1654 = vmatpush3.bf16.msra.mxu1 %v1808_v15  ;;  %1302 = vmatprep.mubr.bf16.mxu1 %v1419_v50  ;;  %s1397_s11 = sshll.u32 %s1946_s2, 4  ;;  %s1398_s11 = int_to_ptr.vmem [resolvable:$true] %s1397_s11 }
  0x6b   :  { %1655 = vmatprep.subr.bf16.mxu1 %v1811_v18  ;;  %s1912_s12 = scalar_lea.vmem %s1398_s11, 128  ;;  %p1917_p3 = scmp.lt.s32.totalorder %s1398_s11, %s1398_s11 }
  0x6c   :  { %1634 = vmatpush3.bf16.msra.mxu0 %v1810_v17  ;;  %p1913_p2 = scmp.ne.s32.totalorder %s1398_s11, %s1912_s12  ;;  %p1918_p4 = scmp.lt.s32.totalorder %s1912_s12, %s1912_s12 }
  0x6d   :  { %1635 = vmatprep.subr.bf16.mxu0 %v1813_v20 }
  0x6e   :  { %1656 = vmatpush3.bf16.msra.mxu1 %v1812_v19  ;;  %p1919_p5 = por %p1918_p4, %p1917_p3 }
  0x6f   :  { %1657 = vmatprep.subr.bf16.mxu1 %v1815_v22 }
  0x70   :  { %1636 = vmatpush3.bf16.msra.mxu0 %v1814_v21  ;;  %p1920_p6 = pnand %p1919_p5, %p1913_p2 }
  0x71   :  { %1637 = vmatprep.subr.bf16.mxu0 %v1817_v24 }
  0x72   :  { %1658 = vmatpush3.bf16.msra.mxu1 %v1816_v23 }
  0x73   :  { %1659 = vmatprep.subr.bf16.mxu1 %v1819_v26 }
  0x74   :  { %1638 = vmatpush3.bf16.msra.mxu0 %v1818_v25 }
  0x75   :  { %1639 = vmatprep.subr.bf16.mxu0 %v1821_v28 }
  0x76   :  { %1660 = vmatpush3.bf16.msra.mxu1 %v1820_v27 }
  0x77   :  { %1661 = vmatprep.subr.bf16.mxu1 %v1823_v30 }
  0x78   :  { %1640 = vmatpush3.bf16.msra.mxu0 %v1822_v29 }
  0x79   :  { %1641 = vmatprep.subr.bf16.mxu0 %v1825_v32 }
  0x7a   :  { %1662 = vmatpush3.bf16.msra.mxu1 %v1824_v31 }
  0x7b   :  { %1663 = vmatprep.subr.bf16.mxu1 %v1827_v34 }
  0x7c   :  { %1642 = vmatpush3.bf16.msra.mxu0 %v1826_v33 }
  0x7d   :  { %1643 = vmatprep.subr.bf16.mxu0 %v1829_v36 }
  0x7e   :  { %1664 = vmatpush3.bf16.msra.mxu1 %v1828_v35 }
  0x7f   :  { %1665 = vmatprep.subr.bf16.mxu1 %v1831_v38 }
  0x80   :  { %1644 = vmatpush3.bf16.msra.mxu0 %v1830_v37 }
  0x81   :  { %1645 = vmatprep.subr.bf16.mxu0 %v1833_v40 }
  0x82   :  { %1666 = vmatpush3.bf16.msra.mxu1 %v1832_v39 }
  0x83   :  { %1667 = vmatprep.subr.bf16.mxu1 %v1835_v42 }
  0x84   :  { %1646 = vmatpush3.bf16.msra.mxu0 %v1834_v41 }
  0x85   :  { %1675 = vmatprep.subr.bf16.mxu0 %v1839_v47 }
  0x86   :  { %1668 = vmatpush3.bf16.msra.mxu1 %v1838_v46 }
  0x87   :  { %1263 = vmatmul.mubr.bf16.vlgmr.msra.gmra.mrb[8].mxu0 %v1416_v44  ;;  %1706 = vmatprep.subr.bf16.mxu1 %v1944_v54 }
  0x88   :  { %1676 = vmatpush3.bf16.msra.mxu0 %v1842_v51  ;;  %1342 = vmatprep.mubr.bf16.mxu0 %v1421_v9 }
  0x89   :  { %1303 = vmatmul.mubr.bf16.vlgmr.msra.gmra.mrb[8].mxu1 %v1418_v49  ;;  %1677 = vmatprep.subr.bf16.mxu0 %v1844_v53 }
  0x8a   :  { %1707 = vmatpush3.bf16.msra.mxu1 %v1843_v52  ;;  %1722 = vmatprep.mubr.msk.bf16.mxu1 %vm1945_vm0, %v1944_v54 }
  0x8b   :  { %1708 = vmatprep.subr.bf16.mxu1 %v1944_v54 }
  0x8c   :  { %1678 = vmatpush3.bf16.msra.mxu0 %v1845_v55 }
  0x8d   :  { %1679 = vmatprep.subr.bf16.mxu0 %v1847_v57 }
  0x8e   :  { %1709 = vmatpush3.bf16.msra.mxu1 %v1846_v56 }
  0x8f   :  { %1710 = vmatprep.subr.bf16.mxu1 %v1944_v54 }
  0x90   :  { %1680 = vmatpush3.bf16.msra.mxu0 %v1848_v58 }
  0x91   :  { %1681 = vmatprep.subr.bf16.mxu0 %v1850_v60 }
  0x92   :  { %1711 = vmatpush3.bf16.msra.mxu1 %v1849_v59 }
  0x93   :  { %1712 = vmatprep.subr.bf16.mxu1 %v1944_v54 }
  0x94   :  { %1682 = vmatpush3.bf16.msra.mxu0 %v1851_v61 }
  0x95   :  { %1683 = vmatprep.subr.bf16.mxu0 %v1853_v62 }
  0x96   :  { %1713 = vmatpush3.bf16.msra.mxu1 %v1852_v63 }
  0x97   :  { %1714 = vmatprep.subr.bf16.mxu1 %v1944_v54 }
  0x98   :  { %1684 = vmatpush3.bf16.msra.mxu0 %v1854_v0 }
  0x99   :  { %1685 = vmatprep.subr.bf16.mxu0 %v1856_v1 }
  0x9a   :  { %1715 = vmatpush3.bf16.msra.mxu1 %v1855_v2 }
  0x9b   :  { %1716 = vmatprep.subr.bf16.mxu1 %v1944_v54 }
  0x9c   :  { %1686 = vmatpush3.bf16.msra.mxu0 %v1857_v3 }
  0x9d   :  { %1687 = vmatprep.subr.bf16.mxu0 %v1859_v4 }
  0x9e   :  { %1717 = vmatpush3.bf16.msra.mxu1 %v1858_v5 }
  0x9f   :  { %1718 = vmatprep.subr.bf16.mxu1 %v1944_v54 }
  0xa0   :  { %1688 = vmatpush3.bf16.msra.mxu0 %v1860_v6 }
  0xa1   :  { %1689 = vmatprep.subr.bf16.mxu0 %v1862_v8 }
  0xa2   :  { %1719 = vmatpush3.bf16.msra.mxu1 %v1861_v10 }
  0xa3   :  { %1720 = vmatprep.subr.bf16.mxu1 %v1944_v54 }
  0xa4   :  { %1690 = vmatpush3.bf16.msra.mxu0 %v1863_v11 }
  0xa6   :  { %1721 = vmatpush3.bf16.msra.mxu1 %v1866_v12 }
  0xa7   :  { %1343 = vmatmul.mubr.bf16.vlgmr.msra.gmra.mrb[12].mxu0 %v1420_v13 }
  0xa9   :  { %1723 = vmatmul.mubr.bf16.vlgmr.msra.gmra.mrb[12].mxu1 %v1867_v14 }
 0x11a   :  { %v1559_v15 = vpop.f32.mrb[0].mxu0 }
 0x11b   :  { %v1560_v17 = vpop.f32.mrb[1].mxu0 }
 0x11c   :  { %v1561_v18 = vadd.f32 %v1560_v17, %v1559_v15  ;;  %v1562_v19 = vpop.f32.mrb[2].mxu0  ;;  %v1581_v20 = vpop.f32.mrb[0].mxu1 }
 0x11d   :  { %v1563_v21 = vpop.f32.mrb[3].mxu0  ;;  %v1582_v22 = vpop.f32.mrb[1].mxu1 }
 0x11e   :  { %v1105_v23 = vadd.f32 %v1561_v18, %v1407_v16  ;;  %v1583_v24 = vadd.f32 %v1582_v22, %v1581_v20  ;;  %v1584_v25 = vpop.f32.mrb[2].mxu1 }
 0x11f   :  { %v1585_v26 = vpop.f32.mrb[3].mxu1 }
 0x120   :  { %v1145_v27 = vadd.f32 %v1583_v24, %v1105_v23 }
 0x13a   :  { %v1603_v28 = vpop.f32.mrb[4].mxu0 }
 0x13b   :  { %v1604_v29 = vpop.f32.mrb[5].mxu0 }
 0x13c   :  { %v1605_v30 = vadd.f32 %v1604_v29, %v1603_v28  ;;  %v1606_v31 = vpop.f32.mrb[6].mxu0  ;;  %v1625_v32 = vpop.f32.mrb[4].mxu1 }
 0x13d   :  { %v1607_v33 = vpop.f32.mrb[7].mxu0  ;;  %v1626_v35 = vpop.f32.mrb[5].mxu1 }
 0x13e   :  { %v1185_v34 = vadd.f32 %v1605_v30, %v1145_v27  ;;  %v1627_v36 = vadd.f32 %v1626_v35, %v1625_v32  ;;  %v1628_v37 = vpop.f32.mrb[6].mxu1 }
 0x13f   :  { %v1629_v38 = vpop.f32.mrb[7].mxu1 }
 0x140   :  { %v1225_v39 = vadd.f32 %v1627_v36, %v1185_v34 }
 0x15a   :  { %v1647_v40 = vpop.f32.mrb[8].mxu0 }
 0x15b   :  { %v1648_v41 = vpop.f32.mrb[9].mxu0 }
 0x15c   :  { %v1649_v42 = vadd.f32 %v1648_v41, %v1647_v40  ;;  %v1650_v43 = vpop.f32.mrb[10].mxu0  ;;  %v1669_v44 = vpop.f32.mrb[8].mxu1 }
 0x15d   :  { %v1651_v45 = vpop.f32.mrb[11].mxu0  ;;  %v1670_v46 = vpop.f32.mrb[9].mxu1 }
 0x15e   :  { %v1265_v47 = vadd.f32 %v1649_v42, %v1225_v39  ;;  %v1671_v48 = vadd.f32 %v1670_v46, %v1669_v44  ;;  %v1672_v49 = vpop.f32.mrb[10].mxu1 }
 0x15f   :  { %v1673_v50 = vpop.f32.mrb[11].mxu1 }
 0x160   :  { %v1305_v51 = vadd.f32 %v1671_v48, %v1265_v47 }
 0x17a   :  { %v1691_v52 = vpop.f32.mrb[12].mxu0 }
 0x17b   :  { %v1692_v53 = vpop.f32.mrb[13].mxu0 }
 0x17c   :  { %v1693_v54 = vadd.f32 %v1692_v53, %v1691_v52  ;;  %v1694_v55 = vpop.f32.mrb[14].mxu0  ;;  %v1384_v56 = vpop.f32.mrb[12].mxu1 }
 0x17d   :  { %v1695_v57 = vpop.f32.mrb[15].mxu0  ;;  %v1724_v58 = vpop.f32.mrb[13].mxu1 }
 0x17e   :  { %v1345_v59 = vadd.f32 %v1693_v54, %v1305_v51  ;;  %v1387_v60 = vpop.f32.mrb[14].mxu1 }
 0x17f   :  { %v1725_v61 = vpop.f32.mrb[15].mxu1 }
 0x180   :  { %v1385_v62 = vadd.f32 %v1384_v56, %v1345_v59 }
 0x182   :  { %1390 = vst [vmem:[#allocation7] sm:$0xff] %v1385_v62 }
 0x183   :  { %1923 = shalt.err (!%p1920_p6)
}
 0x184   :  { %s1924_s15 = scalar_lea.hbm %s2016_s3, 128 }
 0x185   :  { %p1925_p7 = scmp.ne.s32.totalorder %s2016_s3, %s1924_s15  ;;  %p1928_p8 = scmp.lt.u32.totalorder %s1924_s15, %s2016_s3 }
 0x187   :  { %p1930_p9 = pnand %p1928_p8, %p1925_p7 }
 0x189   :  { %1933 = shalt.err (!%p1930_p9)
}
 0x18a   :  { %1400 = dma.vmem_to_hbm [thread:$0]  %s1398_s11, 128, %s2016_s3, [#allocation4]  }
 0x18b   :  { %1938 = dma.done.wait [#allocation4], 128  }
 0x18c   :  { %1939 = vsyncadd [#allocation4], 4294967168 }
 0x18d   :  { %1404 = vsyncpa [#allocation3], 1 }
 0x18e   :  { %1405 = vsyncpa [#allocation6], 1 }
 0x18f   :  { %1406 = vsyncpa [#allocation4], 1 }

</bundles_post_ra>
